<compile_context>
chip_gen: v7x
topology: tpu7x:2x2x1
jax: 0.10.0
libtpu: 0.0.40
codegen_flags: <defaults>
</compile_context>

<pallas_src>
import jax
import jax.numpy as jnp
from jax.experimental import pallas as pl
from jax.experimental.pallas import tpu as pltpu


def residual_block(x_nchw, w1_oihw, b1, w2_oihw, b2):
    """ResidualBlock forward. x_nchw: (N, C, H, W). Weights in torch OIHW layout."""
    N, Cin, H, W = x_nchw.shape
    Cmid = w1_oihw.shape[0]
    Cout = w2_oihw.shape[0]
    assert Cin == Cout, "skip = Identity requires c_in == c_out"

    Hp, Wp = H + 2, W + 2
    S = Hp * Wp                                   # flattened padded spatial size
    Spad = ((S + 127) // 128) * 128               # lane-aligned flat spatial size

    # --- inputs in (N, C, Spad) layout: pad spatially, flatten, pad lanes with zeros
    x = x_nchw.astype(jnp.float32)
    xpad = jnp.pad(x, ((0, 0), (0, 0), (1, 1), (1, 1)))          # (N, C, Hp, Wp)
    xflat = xpad.reshape(N, Cin, S)
    xflat = jnp.pad(xflat, ((0, 0), (0, 0), (0, Spad - S)))      # (N, C, Spad)

    # --- weights: OIHW -> (Cout, 9*Cin) with column index t*Cin + cin, t = kh*3 + kw
    w1m = jnp.transpose(w1_oihw.astype(jnp.float32), (0, 2, 3, 1)).reshape(Cmid, 9 * Cin)
    w2m = jnp.transpose(w2_oihw.astype(jnp.float32), (0, 2, 3, 1)).reshape(Cout, 9 * Cmid)
    b1c = b1.astype(jnp.float32).reshape(Cmid, 1)
    b2c = b2.astype(jnp.float32).reshape(Cout, 1)

    # --- validity mask over the flat padded grid: 1 where (row < H) and (col < W).
    # Multiplying h1 by this mask implements the zero-padding conv2 needs (no scratch
    # re-zeroing), and also zeroes the lane-padding tail / garbage columns.
    f = jnp.arange(Spad)
    mask = (((f < S) & ((f // Wp) < H) & ((f % Wp) < W))
            .astype(jnp.float32).reshape(1, Spad))

    # Tap offsets on the flat padded grid.  conv1 reads xpad[i+kh, j+kw]  -> +kh*Wp+kw.
    # conv2 reads h1[(i+kh-1), (j+kw-1)] (zero outside)                    -> +kh*Wp+kw-(Wp+1).
    d1_offsets = [kh * Wp + kw for kh in range(3) for kw in range(3)]
    d2_offsets = [d - (Wp + 1) for d in d1_offsets]

    def kernel(x_ref, w1_ref, b1_ref, w2_ref, b2_ref, mask_ref, o_ref,
               x9_ref, h9_ref):
        # x_ref : (1, Cin, Spad)       w1_ref: (Cmid, 9*Cin)   b1_ref: (Cmid, 1)
        # w2_ref: (Cout, 9*Cmid)       b2_ref: (Cout, 1)       mask_ref: (1, Spad)
        # o_ref : (1, Cout, Spad)
        # x9_ref: (9*Cin, Spad) scratch   h9_ref: (9*Cmid, Spad) scratch
        xf = x_ref[0]                                        # (Cin, Spad)

        # ---- conv1 im2col: stack 9 lane-rotated copies along K ----
        taps1 = {}
        for t, d in enumerate(d1_offsets):
            tap = xf if d == 0 else pltpu.roll(xf, shift=(-d) % Spad, axis=1)
            x9_ref[t * Cin:(t + 1) * Cin, :] = tap
            taps1[d] = tap
        skip = taps1[Wp + 1]                                 # centre tap == unpadded x

        # ---- conv1: one matmul, K = 9*Cin ----
        h1 = jnp.maximum(
            jnp.dot(w1_ref[...], x9_ref[...],
                    preferred_element_type=jnp.float32) + b1_ref[...], 0.0)
        h1 = h1 * mask_ref[...]                              # implicit zero-pad for conv2

        # ---- conv2 im2col ----
        for t, d in enumerate(d2_offsets):
            tap = h1 if d == 0 else pltpu.roll(h1, shift=(-d) % Spad, axis=1)
            h9_ref[t * Cmid:(t + 1) * Cmid, :] = tap

        # ---- conv2: one matmul, K = 9*Cmid, then ReLU and residual add ----
        main = jnp.maximum(
            jnp.dot(w2_ref[...], h9_ref[...],
                    preferred_element_type=jnp.float32) + b2_ref[...], 0.0)
        o_ref[0] = (main + skip).astype(o_ref.dtype)

    out_flat = pl.pallas_call(
        kernel,
        out_shape=jax.ShapeDtypeStruct((N, Cout, Spad), jnp.float32),
        grid_spec=pltpu.PrefetchScalarGridSpec(
            num_scalar_prefetch=0,
            grid=(N,),
            in_specs=[
                pl.BlockSpec((1, Cin, Spad), lambda n: (n, 0, 0)),
                pl.BlockSpec((Cmid, 9 * Cin), lambda n: (0, 0)),
                pl.BlockSpec((Cmid, 1), lambda n: (0, 0)),
                pl.BlockSpec((Cout, 9 * Cmid), lambda n: (0, 0)),
                pl.BlockSpec((Cout, 1), lambda n: (0, 0)),
                pl.BlockSpec((1, Spad), lambda n: (0, 0)),
            ],
            out_specs=pl.BlockSpec((1, Cout, Spad), lambda n: (n, 0, 0)),
            scratch_shapes=[
                pltpu.VMEM((9 * Cin, Spad), jnp.float32),
                pltpu.VMEM((9 * Cmid, Spad), jnp.float32),
            ],
        ),
        compiler_params=pltpu.CompilerParams(
            dimension_semantics=("parallel",)),
    )(xflat, w1m, b1c, w2m, b2c, mask)

    # (N, Cout, Spad) -> NCHW: drop lane padding, reshape to padded grid, take interior.
    out = out_flat[:, :, :S].reshape(N, Cout, Hp, Wp)[:, :, :H, :W]
    return out


def _reference(x_nchw, w1, b1, w2, b2):
    """Pure-JAX reference matching the PyTorch forward."""
    def conv(x, w):
        dn = jax.lax.conv_dimension_numbers(x.shape, w.shape,
                                            ('NCHW', 'OIHW', 'NCHW'))
        return jax.lax.conv_general_dilated(x, w, (1, 1), 'SAME',
                                            dimension_numbers=dn)
    h = jax.nn.relu(conv(x_nchw, w1) + b1[None, :, None, None])
    h = jax.nn.relu(conv(h, w2) + b2[None, :, None, None])
    return h + x_nchw  # skip = Identity


if __name__ == "__main__":
    N, C, Cmid, H, W = 2, 4, 8, 16, 16

    key = jax.random.PRNGKey(0)
    kx, kw1, kb1, kw2, kb2 = jax.random.split(key, 5)

    x = jax.random.normal(kx, (N, C, H, W), dtype=jnp.float32)
    # Deterministic, torch-Conv2d-shaped parameters (OIHW + per-out-channel bias)
    w1 = 0.1 * jax.random.normal(kw1, (Cmid, C, 3, 3), dtype=jnp.float32)
    b1 = 0.1 * jax.random.normal(kb1, (Cmid,), dtype=jnp.float32)
    w2 = 0.1 * jax.random.normal(kw2, (C, Cmid, 3, 3), dtype=jnp.float32)
    b2 = 0.1 * jax.random.normal(kb2, (C,), dtype=jnp.float32)

    out = residual_block(x, w1, b1, w2, b2)
    out = jax.block_until_ready(out)

    ref = _reference(x, w1, b1, w2, b2)
    assert out.shape == (N, C, H, W)
    assert jnp.allclose(out, ref, atol=1e-3, rtol=1e-3), "mismatch vs reference"

    print("KERNEL_OK")
</pallas_src>

<mosaic_0001>
module attributes {stable_mosaic.version = 11 : i64} {
  func.func @kernel(%arg0: i32, %arg1: memref<1x4x384xf32, #tpu.memory_space<vmem>>, %arg2: memref<8x36xf32, #tpu.memory_space<vmem>>, %arg3: memref<8x1xf32, #tpu.memory_space<vmem>>, %arg4: memref<4x72xf32, #tpu.memory_space<vmem>>, %arg5: memref<4x1xf32, #tpu.memory_space<vmem>>, %arg6: memref<1x384xf32, #tpu.memory_space<vmem>>, %arg7: memref<1x4x384xf32, #tpu.memory_space<vmem>>, %arg8: memref<36x384xf32, #tpu.memory_space<vmem>>, %arg9: memref<72x384xf32, #tpu.memory_space<vmem>>) attributes {dimension_semantics = [#tpu.dimension_semantics<parallel>], iteration_bounds = array<i64: 2>, scalar_prefetch = 0 : i64, scratch_operands = 2 : i64, tpu.core_type = #tpu.core_type<tc>, window_params = [{transform_indices = @transform_0, window_bounds = array<i64: 1, 4, 384>}, {pipeline_mode = #tpu.pipeline_mode<synchronous>, transform_indices = @transform_1, window_bounds = array<i64: 8, 36>}, {pipeline_mode = #tpu.pipeline_mode<synchronous>, transform_indices = @transform_2, window_bounds = array<i64: 8, 1>}, {pipeline_mode = #tpu.pipeline_mode<synchronous>, transform_indices = @transform_3, window_bounds = array<i64: 4, 72>}, {pipeline_mode = #tpu.pipeline_mode<synchronous>, transform_indices = @transform_4, window_bounds = array<i64: 4, 1>}, {pipeline_mode = #tpu.pipeline_mode<synchronous>, transform_indices = @transform_5, window_bounds = array<i64: 1, 384>}, {transform_indices = @transform_6, window_bounds = array<i64: 1, 4, 384>}]} {
    %c0 = arith.constant 0 : index
    %c0_0 = arith.constant 0 : index
    %c0_1 = arith.constant 0 : index
    %0 = vector.load %arg1[%c0, %c0_0, %c0_1] : memref<1x4x384xf32, #tpu.memory_space<vmem>>, vector<1x4x384xf32>
    %1 = vector.shape_cast %0 : vector<1x4x384xf32> to vector<4x384xf32>
    %c0_2 = arith.constant 0 : index
    %c0_3 = arith.constant 0 : index
    %2 = vector.load %arg8[%c0_2, %c0_3] : memref<36x384xf32, #tpu.memory_space<vmem>>, vector<4x384xf32>
    tpu.vector_store %arg8[%c0_2, %c0_3], %1 {strides = array<i32>} : memref<36x384xf32, #tpu.memory_space<vmem>>, vector<4x384xf32>,
    %c383_i32 = arith.constant 383 : i32
    %3 = tpu.dynamic_rotate %1 by %c383_i32 dim 1 : vector<4x384xf32>, i32 -> vector<4x384xf32>
    %c4 = arith.constant 4 : index
    %c0_4 = arith.constant 0 : index
    %4 = vector.load %arg8[%c4, %c0_4] : memref<36x384xf32, #tpu.memory_space<vmem>>, vector<4x384xf32>
    tpu.vector_store %arg8[%c4, %c0_4], %3 {strides = array<i32>} : memref<36x384xf32, #tpu.memory_space<vmem>>, vector<4x384xf32>,
    %c382_i32 = arith.constant 382 : i32
    %5 = tpu.dynamic_rotate %1 by %c382_i32 dim 1 : vector<4x384xf32>, i32 -> vector<4x384xf32>
    %c8 = arith.constant 8 : index
    %c0_5 = arith.constant 0 : index
    %6 = vector.load %arg8[%c8, %c0_5] : memref<36x384xf32, #tpu.memory_space<vmem>>, vector<4x384xf32>
    tpu.vector_store %arg8[%c8, %c0_5], %5 {strides = array<i32>} : memref<36x384xf32, #tpu.memory_space<vmem>>, vector<4x384xf32>,
    %c366_i32 = arith.constant 366 : i32
    %7 = tpu.dynamic_rotate %1 by %c366_i32 dim 1 : vector<4x384xf32>, i32 -> vector<4x384xf32>
    %c12 = arith.constant 12 : index
    %c0_6 = arith.constant 0 : index
    %8 = vector.load %arg8[%c12, %c0_6] : memref<36x384xf32, #tpu.memory_space<vmem>>, vector<4x384xf32>
    tpu.vector_store %arg8[%c12, %c0_6], %7 {strides = array<i32>} : memref<36x384xf32, #tpu.memory_space<vmem>>, vector<4x384xf32>,
    %c365_i32 = arith.constant 365 : i32
    %9 = tpu.dynamic_rotate %1 by %c365_i32 dim 1 : vector<4x384xf32>, i32 -> vector<4x384xf32>
    %c16 = arith.constant 16 : index
    %c0_7 = arith.constant 0 : index
    %10 = vector.load %arg8[%c16, %c0_7] : memref<36x384xf32, #tpu.memory_space<vmem>>, vector<4x384xf32>
    tpu.vector_store %arg8[%c16, %c0_7], %9 {strides = array<i32>} : memref<36x384xf32, #tpu.memory_space<vmem>>, vector<4x384xf32>,
    %c364_i32 = arith.constant 364 : i32
    %11 = tpu.dynamic_rotate %1 by %c364_i32 dim 1 : vector<4x384xf32>, i32 -> vector<4x384xf32>
    %c20 = arith.constant 20 : index
    %c0_8 = arith.constant 0 : index
    %12 = vector.load %arg8[%c20, %c0_8] : memref<36x384xf32, #tpu.memory_space<vmem>>, vector<4x384xf32>
    tpu.vector_store %arg8[%c20, %c0_8], %11 {strides = array<i32>} : memref<36x384xf32, #tpu.memory_space<vmem>>, vector<4x384xf32>,
    %c348_i32 = arith.constant 348 : i32
    %13 = tpu.dynamic_rotate %1 by %c348_i32 dim 1 : vector<4x384xf32>, i32 -> vector<4x384xf32>
    %c24 = arith.constant 24 : index
    %c0_9 = arith.constant 0 : index
    %14 = vector.load %arg8[%c24, %c0_9] : memref<36x384xf32, #tpu.memory_space<vmem>>, vector<4x384xf32>
    tpu.vector_store %arg8[%c24, %c0_9], %13 {strides = array<i32>} : memref<36x384xf32, #tpu.memory_space<vmem>>, vector<4x384xf32>,
    %c347_i32 = arith.constant 347 : i32
    %15 = tpu.dynamic_rotate %1 by %c347_i32 dim 1 : vector<4x384xf32>, i32 -> vector<4x384xf32>
    %c28 = arith.constant 28 : index
    %c0_10 = arith.constant 0 : index
    %16 = vector.load %arg8[%c28, %c0_10] : memref<36x384xf32, #tpu.memory_space<vmem>>, vector<4x384xf32>
    tpu.vector_store %arg8[%c28, %c0_10], %15 {strides = array<i32>} : memref<36x384xf32, #tpu.memory_space<vmem>>, vector<4x384xf32>,
    %c346_i32 = arith.constant 346 : i32
    %17 = tpu.dynamic_rotate %1 by %c346_i32 dim 1 : vector<4x384xf32>, i32 -> vector<4x384xf32>
    %c32 = arith.constant 32 : index
    %c0_11 = arith.constant 0 : index
    %18 = vector.load %arg8[%c32, %c0_11] : memref<36x384xf32, #tpu.memory_space<vmem>>, vector<4x384xf32>
    tpu.vector_store %arg8[%c32, %c0_11], %17 {strides = array<i32>} : memref<36x384xf32, #tpu.memory_space<vmem>>, vector<4x384xf32>,
    %c0_12 = arith.constant 0 : index
    %c0_13 = arith.constant 0 : index
    %19 = vector.load %arg2[%c0_12, %c0_13] : memref<8x36xf32, #tpu.memory_space<vmem>>, vector<8x36xf32>
    %c0_14 = arith.constant 0 : index
    %c0_15 = arith.constant 0 : index
    %20 = vector.load %arg8[%c0_14, %c0_15] : memref<36x384xf32, #tpu.memory_space<vmem>>, vector<36x384xf32>
    %cst = arith.constant dense<0.000000e+00> : vector<8x384xf32>
    %21 = tpu.matmul %19, %20, %cst {dimension_numbers = #tpu.dot_dimension_numbers<[1], [0], [0], [1], [0, 0, 1, 1], [], []>} : vector<8x36xf32>, vector<36x384xf32>, vector<8x384xf32> -> vector<8x384xf32>
    %c0_16 = arith.constant 0 : index
    %c0_17 = arith.constant 0 : index
    %22 = vector.load %arg3[%c0_16, %c0_17] : memref<8x1xf32, #tpu.memory_space<vmem>>, vector<8x1xf32>
    %23 = vector.broadcast %22 : vector<8x1xf32> to vector<8x384xf32>
    %24 = arith.addf %21, %23 : vector<8x384xf32>
    %cst_18 = arith.constant 0.000000e+00 : f32
    %25 = vector.broadcast %cst_18 : f32 to vector<8x384xf32>
    %26 = arith.maximumf %24, %25 : vector<8x384xf32>
    %c0_19 = arith.constant 0 : index
    %c0_20 = arith.constant 0 : index
    %27 = vector.load %arg6[%c0_19, %c0_20] : memref<1x384xf32, #tpu.memory_space<vmem>>, vector<1x384xf32>
    %28 = vector.broadcast %27 : vector<1x384xf32> to vector<8x384xf32>
    %29 = arith.mulf %26, %28 : vector<8x384xf32>
    %c19_i32 = arith.constant 19 : i32
    %30 = tpu.dynamic_rotate %29 by %c19_i32 dim 1 : vector<8x384xf32>, i32 -> vector<8x384xf32>
    %c0_21 = arith.constant 0 : index
    %c0_22 = arith.constant 0 : index
    %31 = vector.load %arg9[%c0_21, %c0_22] : memref<72x384xf32, #tpu.memory_space<vmem>>, vector<8x384xf32>
    tpu.vector_store %arg9[%c0_21, %c0_22], %30 {strides = array<i32>} : memref<72x384xf32, #tpu.memory_space<vmem>>, vector<8x384xf32>,
    %c18_i32 = arith.constant 18 : i32
    %32 = tpu.dynamic_rotate %29 by %c18_i32 dim 1 : vector<8x384xf32>, i32 -> vector<8x384xf32>
    %c8_23 = arith.constant 8 : index
    %c0_24 = arith.constant 0 : index
    %33 = vector.load %arg9[%c8_23, %c0_24] : memref<72x384xf32, #tpu.memory_space<vmem>>, vector<8x384xf32>
    tpu.vector_store %arg9[%c8_23, %c0_24], %32 {strides = array<i32>} : memref<72x384xf32, #tpu.memory_space<vmem>>, vector<8x384xf32>,
    %c17_i32 = arith.constant 17 : i32
    %34 = tpu.dynamic_rotate %29 by %c17_i32 dim 1 : vector<8x384xf32>, i32 -> vector<8x384xf32>
    %c16_25 = arith.constant 16 : index
    %c0_26 = arith.constant 0 : index
    %35 = vector.load %arg9[%c16_25, %c0_26] : memref<72x384xf32, #tpu.memory_space<vmem>>, vector<8x384xf32>
    tpu.vector_store %arg9[%c16_25, %c0_26], %34 {strides = array<i32>} : memref<72x384xf32, #tpu.memory_space<vmem>>, vector<8x384xf32>,
    %c1_i32 = arith.constant 1 : i32
    %36 = tpu.dynamic_rotate %29 by %c1_i32 dim 1 : vector<8x384xf32>, i32 -> vector<8x384xf32>
    %c24_27 = arith.constant 24 : index
    %c0_28 = arith.constant 0 : index
    %37 = vector.load %arg9[%c24_27, %c0_28] : memref<72x384xf32, #tpu.memory_space<vmem>>, vector<8x384xf32>
    tpu.vector_store %arg9[%c24_27, %c0_28], %36 {strides = array<i32>} : memref<72x384xf32, #tpu.memory_space<vmem>>, vector<8x384xf32>,
    %c32_29 = arith.constant 32 : index
    %c0_30 = arith.constant 0 : index
    %38 = vector.load %arg9[%c32_29, %c0_30] : memref<72x384xf32, #tpu.memory_space<vmem>>, vector<8x384xf32>
    tpu.vector_store %arg9[%c32_29, %c0_30], %29 {strides = array<i32>} : memref<72x384xf32, #tpu.memory_space<vmem>>, vector<8x384xf32>,
    %c383_i32_31 = arith.constant 383 : i32
    %39 = tpu.dynamic_rotate %29 by %c383_i32_31 dim 1 : vector<8x384xf32>, i32 -> vector<8x384xf32>
    %c40 = arith.constant 40 : index
    %c0_32 = arith.constant 0 : index
    %40 = vector.load %arg9[%c40, %c0_32] : memref<72x384xf32, #tpu.memory_space<vmem>>, vector<8x384xf32>
    tpu.vector_store %arg9[%c40, %c0_32], %39 {strides = array<i32>} : memref<72x384xf32, #tpu.memory_space<vmem>>, vector<8x384xf32>,
    %c367_i32 = arith.constant 367 : i32
    %41 = tpu.dynamic_rotate %29 by %c367_i32 dim 1 : vector<8x384xf32>, i32 -> vector<8x384xf32>
    %c48 = arith.constant 48 : index
    %c0_33 = arith.constant 0 : index
    %42 = vector.load %arg9[%c48, %c0_33] : memref<72x384xf32, #tpu.memory_space<vmem>>, vector<8x384xf32>
    tpu.vector_store %arg9[%c48, %c0_33], %41 {strides = array<i32>} : memref<72x384xf32, #tpu.memory_space<vmem>>, vector<8x384xf32>,
    %c366_i32_34 = arith.constant 366 : i32
    %43 = tpu.dynamic_rotate %29 by %c366_i32_34 dim 1 : vector<8x384xf32>, i32 -> vector<8x384xf32>
    %c56 = arith.constant 56 : index
    %c0_35 = arith.constant 0 : index
    %44 = vector.load %arg9[%c56, %c0_35] : memref<72x384xf32, #tpu.memory_space<vmem>>, vector<8x384xf32>
    tpu.vector_store %arg9[%c56, %c0_35], %43 {strides = array<i32>} : memref<72x384xf32, #tpu.memory_space<vmem>>, vector<8x384xf32>,
    %c365_i32_36 = arith.constant 365 : i32
    %45 = tpu.dynamic_rotate %29 by %c365_i32_36 dim 1 : vector<8x384xf32>, i32 -> vector<8x384xf32>
    %c64 = arith.constant 64 : index
    %c0_37 = arith.constant 0 : index
    %46 = vector.load %arg9[%c64, %c0_37] : memref<72x384xf32, #tpu.memory_space<vmem>>, vector<8x384xf32>
    tpu.vector_store %arg9[%c64, %c0_37], %45 {strides = array<i32>} : memref<72x384xf32, #tpu.memory_space<vmem>>, vector<8x384xf32>,
    %c0_38 = arith.constant 0 : index
    %c0_39 = arith.constant 0 : index
    %47 = vector.load %arg4[%c0_38, %c0_39] : memref<4x72xf32, #tpu.memory_space<vmem>>, vector<4x72xf32>
    %c0_40 = arith.constant 0 : index
    %c0_41 = arith.constant 0 : index
    %48 = vector.load %arg9[%c0_40, %c0_41] : memref<72x384xf32, #tpu.memory_space<vmem>>, vector<72x384xf32>
    %cst_42 = arith.constant dense<0.000000e+00> : vector<4x384xf32>
    %49 = tpu.matmul %47, %48, %cst_42 {dimension_numbers = #tpu.dot_dimension_numbers<[1], [0], [0], [1], [0, 0, 1, 1], [], []>} : vector<4x72xf32>, vector<72x384xf32>, vector<4x384xf32> -> vector<4x384xf32>
    %c0_43 = arith.constant 0 : index
    %c0_44 = arith.constant 0 : index
    %50 = vector.load %arg5[%c0_43, %c0_44] : memref<4x1xf32, #tpu.memory_space<vmem>>, vector<4x1xf32>
    %51 = vector.broadcast %50 : vector<4x1xf32> to vector<4x384xf32>
    %52 = arith.addf %49, %51 : vector<4x384xf32>
    %cst_45 = arith.constant 0.000000e+00 : f32
    %53 = vector.broadcast %cst_45 : f32 to vector<4x384xf32>
    %54 = arith.maximumf %52, %53 : vector<4x384xf32>
    %55 = arith.addf %54, %9 : vector<4x384xf32>
    %c0_46 = arith.constant 0 : index
    %c0_47 = arith.constant 0 : index
    %c0_48 = arith.constant 0 : index
    %56 = vector.load %arg7[%c0_46, %c0_47, %c0_48] : memref<1x4x384xf32, #tpu.memory_space<vmem>>, vector<1x4x384xf32>
    %57 = vector.shape_cast %56 : vector<1x4x384xf32> to vector<4x384xf32>
    %58 = vector.shape_cast %55 : vector<4x384xf32> to vector<1x4x384xf32>
    tpu.vector_store %arg7[%c0_46, %c0_47, %c0_48], %58 {strides = array<i32>} : memref<1x4x384xf32, #tpu.memory_space<vmem>>, vector<1x4x384xf32>,
    return
  }
  func.func @transform_0(%arg0: i32) -> (i32, i32, i32) {
    %c0_i32 = arith.constant 0 : i32
    %c0_i32_0 = arith.constant 0 : i32
    %c0_i32_1 = arith.constant 0 : i32
    return %arg0, %c0_i32, %c0_i32_0 : i32, i32, i32
  }
  func.func @transform_1(%arg0: i32) -> (i32, i32) {
    %c0_i32 = arith.constant 0 : i32
    %c0_i32_0 = arith.constant 0 : i32
    %c0_i32_1 = arith.constant 0 : i32
    return %c0_i32, %c0_i32_0 : i32, i32
  }
  func.func @transform_2(%arg0: i32) -> (i32, i32) {
    %c0_i32 = arith.constant 0 : i32
    %c0_i32_0 = arith.constant 0 : i32
    %c0_i32_1 = arith.constant 0 : i32
    return %c0_i32, %c0_i32_0 : i32, i32
  }
  func.func @transform_3(%arg0: i32) -> (i32, i32) {
    %c0_i32 = arith.constant 0 : i32
    %c0_i32_0 = arith.constant 0 : i32
    %c0_i32_1 = arith.constant 0 : i32
    return %c0_i32, %c0_i32_0 : i32, i32
  }
  func.func @transform_4(%arg0: i32) -> (i32, i32) {
    %c0_i32 = arith.constant 0 : i32
    %c0_i32_0 = arith.constant 0 : i32
    %c0_i32_1 = arith.constant 0 : i32
    return %c0_i32, %c0_i32_0 : i32, i32
  }
  func.func @transform_5(%arg0: i32) -> (i32, i32) {
    %c0_i32 = arith.constant 0 : i32
    %c0_i32_0 = arith.constant 0 : i32
    %c0_i32_1 = arith.constant 0 : i32
    return %c0_i32, %c0_i32_0 : i32, i32
  }
  func.func @transform_6(%arg0: i32) -> (i32, i32, i32) {
    %c0_i32 = arith.constant 0 : i32
    %c0_i32_0 = arith.constant 0 : i32
    %c0_i32_1 = arith.constant 0 : i32
    return %arg0, %c0_i32, %c0_i32_0 : i32, i32, i32
  }
}

</mosaic_0001>

<bundles_post_ra>
// kernel: tpu_custom_call.1
= control target key start
LH: loop header
LB: loop body
LE: loop exit
PB: predicated region body
PF: predicated region fallthrough
CT: control target
= control target key end

     0   :  { %11 = vsyncpa [#allocation5], 0  ;;  %s1682_s0 = inlined_call_operand.hbm [shape: f32[2,4,384], index: 0, kind: input, shape index: {}]   ;;  %s1683_s1 = inlined_call_operand.vmem [shape: f32[8,36], index: 1, kind: input, shape index: {}]   ;;  %s1684_s2 = inlined_call_operand.vmem [shape: f32[8,1], index: 2, kind: input, shape index: {}]   ;;  %s1685_s3 = inlined_call_operand.vmem [shape: f32[4,72], index: 3, kind: input, shape index: {}]   ;;  %s1686_s4 = inlined_call_operand.vmem [shape: f32[4,1], index: 4, kind: input, shape index: {}]   ;;  %s1687_s5 = inlined_call_operand.vmem [shape: f32[1,384], index: 5, kind: input, shape index: {}]   ;;  %s1688_s6 = inlined_call_operand.hbm [shape: f32[2,4,384], index: 6, kind: output, shape index: {}]  }
   0x1   :  { %13 = vsyncpa [#allocation5 + $0x1], 0 }
   0x2   :  { %14 = vsyncpa [#allocation6], 0 }
   0x3   :  { %16 = vsyncpa [#allocation6 + $0x1], 0  ;;  %s1362_s21 = smov 0   ;;  %s1364_s22 = smov 0  }
   0x4   :  { %s1366_s23 = smov 0   ;;  %s1368_s24 = smov 0  }
   0x5 LB: > { %s1383_s25 = sadd.s32 4294967295, %s1306_s24   ;;  %s998_s26 = sadd.s32 4294967294, %s1306_s24   ;;  %s1306_s24 = sphi %s1368_s24, %s1702_s24   ;;  %s1302_s23 = sphi %s1366_s23, %s1701_s23   ;;  %s1298_s22 = sphi %s1364_s22, %s1700_s22   ;;  %s1294_s21 = sphi %s1362_s21, %s1699_s21  }
   0x6   : > { %s1387_s27 = sadd.s32 1, %s1306_s24   ;;  %s29_s28 = sadd.s32 1, %s1302_s23 }
   0x7   : > { %s26_s29 = ssub.s32 %s1306_s24, %s1387_s27  ;;  %p36_p0 = scmp.ne.s32.totalorder %s1302_s23, %s1298_s22 }
   0x8   : > { %p27_p1 = scmp.eq.s32.totalorder %s26_s29, 0  ;;  %p37_p2 = scmp.eq.s32.totalorder %s1306_s24, 0 }
   0x9   : > { %p42_p3 = scmp.ne.s32.totalorder %s1298_s22, %s1294_s21  ;;  %p43_p4 = scmp.eq.s32.totalorder %s1383_s25, 0 }
   0xa   : > { %s1399_s30 = scalar_select %p27_p1, %s1302_s23, %s29_s28  }
   0xb   : > { %p38_p5 = por %p37_p2, %p36_p0  ;;  %p1401_p6 = por %p43_p4, %p42_p3 }
   0xc   : > { %p171_p7 = scmp.eq.s32.totalorder %s1383_s25, 1  ;;  %p177_p8 = scmp.eq.s32.totalorder %s998_s26, 1 }
   0xd   : > { %p1121_p10 = scmp.lt.s32.totalorder %s1306_s24, 2  ;;  %s212_s10 = sand.u32 1, %s1302_s23  }
   0xe   : > { %p1408_p11 = por %p171_p7, %p36_p0  ;;  %p1412_p12 = por %p177_p8, %p42_p3 }
   0xf   : > { %s1106_s11 = smul.u32 192, %s1306_s24  ;;  %p1423_p13 = pnand %p1121_p10, %p38_p5 }
  0x10   : > { %s1691_s8 = scalar_select %p1408_p11, 1, 0 }
  0x11   : > { %s1692_s9 = scalar_select %p1412_p12, 1, 0 }
  0x12   : > { %s1105_s12 = smul.u32 12, %s212_s10  ;;  %s1421_s15 = scalar_lea.hbm %s1682_s0, %s1106_s11 }
  0x13   : > { %s213_s19 = scalar_lea.sflag [#allocation5], %s212_s10  ;;  %s1210_s20 = scalar_lea.hbm %s1421_s15, 192 }
  0x14   : > { %s216_s17 = scalar_lea.vmem [#allocation4], %s1105_s12  ;;  %p1211_p2 = scmp.ne.s32.totalorder %s1421_s15, %s1210_s20 }
  0x15   : > { %s224_s18 = sshll.u32 %s216_s17, 4  ;;  %p1212_p3 = pneg %p1423_p13  ;;  %s1428_s18 = int_to_ptr.vmem [resolvable:$true] %s224_s18 }
  0x16   : > { %s1215_s29 = scalar_lea.hbm %s1682_s0, 384  ;;  %p1216_p7 = scmp.lt.u32.totalorder %s1421_s15, %s1682_s0 }
  0x17   : > { %p1213_p4 = pnand %p1212_p3, %p1211_p2  ;;  %p1217_p8 = scmp.lt.u32.totalorder %s1215_s29, %s1210_s20 }
  0x18   : > { %p1219_p9 = scmp.lt.u32.totalorder %s1210_s20, %s1421_s15 }
  0x19   : > { %p1214_p5 = pneg %p1213_p4  ;;  %p1218_p10 = por %p1217_p8, %p1216_p7 }
  0x1b   : > { %p1220_p0 = por %p1219_p9, %p1218_p10 }
  0x1d   : > { %p1221_p1 = pnand %p1220_p0, %p1214_p5 }
  0x1f   : > { %1224 = shalt.err (!%p1221_p1)
}
  0x20   : > { %s1225_s10 = scalar_lea.vmem %s1428_s18, 192  ;;  %s1308_s12 = smov [#allocation4]  }
  0x21   : > { %p1226_p2 = scmp.ne.s32.totalorder %s1428_s18, %s1225_s10  ;;  %s1230_s14 = sshll.u32 %s1308_s12, 4  ;;  %s1231_s14 = int_to_ptr.vmem [resolvable:$false] %s1230_s14 }
  0x22   : > { %s1232_s17 = scalar_lea.vmem %s1231_s14, 384  ;;  %p1233_p11 = scmp.lt.s32.totalorder %s1428_s18, %s1231_s14 }
  0x23   : > { %p1228_p4 = pnand %p1226_p2, %p1212_p3  ;;  %p1234_p7 = scmp.lt.s32.totalorder %s1232_s17, %s1225_s10 }
  0x25   : > { %p1229_p12 = pneg %p1228_p4  ;;  %p1235_p8 = por %p1234_p7, %p1233_p11 }
  0x27   : > { %p1236_p9 = pnand %p1235_p8, %p1229_p12 }
  0x29   : > { %1239 = shalt.err (!%p1236_p9)
}
  0x2a   : > { %1116 = dma.hbm_to_vmem [thread:$0]  (!%p1423_p13), %s1421_s15, 192, %s1428_s18, %s213_s19  }
  0x2b   : > { %p1694_p0 = scmp.lt.s32.totalorder %s1306_s24, 3  ;;  %p1695_p1 = scmp.ge.s32.totalorder %s1306_s24, 1 }
  0x2d   : > { %p230_p3 = pnand %p1695_p1, %p1694_p0 }
  0x2e   : > { %s1461_s20 = sand.u32 (!%p230_p3), 1, %s1298_s22  }
  0x2f   : > { %233 = sbr.rel (%p230_p3) target bundleno = 831 (0x33f), region = 44  ;;  %s236_s28 = scalar_lea.sflag (!%p230_p3), [#allocation5], %s1461_s20 }
  0x30   : > { %s1107_s26 = smul.u32 (!%p230_p3), 12, %s1461_s20 }
  0x32   : > { %s239_s16 = scalar_lea.vmem (!%p230_p3), [#allocation4], %s1107_s26 }
  0x36   : > { %1285 = dma.done.wait (%p1401_p6), %s236_s28, 192  }
  0x37   : > { %1287 = vsyncadd (%p1401_p6), %s236_s28, 4294967104  ;;  %v269_v0 = vld [vmem:[%s239_s16 + $0x8] sm:$0xf]  ;;  %v268_v1 = vld [vmem:[%s239_s16] sm:$0xff]  ;;  %s1309_s15 = smov 110   ;;  %s1310_s18 = smov 127   ;;  %v282_v7 = vlaneseq }
  0x38   : > { %317 = vrot.lane.b32.xlu1 %v269_v0, %s1309_s15  ;;  %275 = vst [vmem:[#allocation2 + $0x10] sm:$0xf] %v269_v0  ;;  %280 = vrot.lane.b32.xlu0 %v269_v0, %s1310_s18  ;;  %273 = vst [vmem:[#allocation2] sm:$0xf] %v268_v1  ;;  %v271_v2 = vcombine.high %v268_v1, %v268_v1  ;;  %s1311_s7 = smov 126   ;;  %v1312_v3 = vmov 0.0|0.0  }
  0x39   : > { %1071 = vmatprep.subr.bf16.mxu1 %v1312_v3  ;;  %s1313_s19 = smov 108   ;;  %s1314_s29 = smov 91   ;;  %v1318_v4 = vmov 0.0   ;;  %vm1319_vm0 = vmmov 0   ;;  %v1320_v5 = vmov 0   ;;  %v434_v6 = vld [vmem:[%s1684_s2] sm:$0xff] }
  0x3a   : > { %274 = vst [vmem:[#allocation2 + $0x8] sm:$0xf] %v271_v2  ;;  %s1315_s11 = smov 109   ;;  %s1316_s13 = smov 92   ;;  %518 = vmatprep.mubr.f32.mxu0 %v1318_v4  ;;  %1039 = vmatprep.mubr.msk.f32.mxu1 %vm1319_vm0, %v1318_v4  ;;  %v1488_v8 = vand.u32 127, %v282_v7  ;;  %vm444_vm9 = vcmask 1043456  }
  0x3b   : > { %s1317_s10 = smov 90   ;;  %1172 = vset.pattern.permute.xlu0 %v1320_v5  ;;  %1208 = vset.pattern.permute.xlu1 %v1320_v5  ;;  %vm440_vm10 = vcmask 293888   ;;  %s1325_s12 = smov 111  }
  0x3c   : > { %313 = vrot.lane.b32.xlu1 %v268_v1, %s1309_s15  ;;  %276 = vrot.lane.b32.xlu0 %v268_v1, %s1310_s18  ;;  %vm319_vm1 = vcmp.lt.s32.totalorder %v1488_v8, 110  ;;  %vm284_vm2 = vcmp.lt.s32.totalorder %v1488_v8, 127  ;;  %vm306_vm3 = vcmp.lt.s32.totalorder %v1488_v8, 126  ;;  %vm354_vm4 = vcmp.lt.s32.totalorder %v1488_v8, 108  ;;  %s267_s28 = scalar_lea.vmem [#allocation7], %s1107_s26  ;;  %p1696_p11 = scmp.ne.s32.totalorder %s1691_s8, 0 }
  0x3d   : > { %vm389_vm5 = vcmp.lt.s32.totalorder %v1488_v8, 91  ;;  %vm341_vm6 = vcmp.lt.s32.totalorder %v1488_v8, 109  ;;  %vm376_vm7 = vcmp.lt.s32.totalorder %v1488_v8, 92  ;;  %vm411_vm8 = vcmp.lt.s32.totalorder %v1488_v8, 90  ;;  %s928_s16 = sshll.u32 %s267_s28, 4  ;;  %s1326_s26 = smov [#allocation7]   ;;  %s1640_s16 = int_to_ptr.vmem [resolvable:$true] %s928_s16 }
  0x3e   : > { %vm624_vm11 = vcmp.lt.s32.totalorder %v1488_v8, 19  ;;  %vm637_vm12 = vcmp.lt.s32.totalorder %v1488_v8, 18  ;;  %vm650_vm13 = vcmp.lt.s32.totalorder %v1488_v8, 17  ;;  %vm663_vm14 = vcmp.lt.s32.totalorder %v1488_v8, 1 }
  0x3f   : > { %vm691_vm15 = vcmp.lt.s32.totalorder %v1488_v8, 111 }
  0x40   : > { %315 = vrot.lane.b32.xlu1 %v271_v2, %s1309_s15  ;;  %278 = vrot.lane.b32.xlu0 %v271_v2, %s1310_s18 }
  0x44   : > { %304 = vrot.lane.b32.xlu1 %v269_v0, %s1311_s7  ;;  %302 = vrot.lane.b32.xlu0 %v271_v2, %s1311_s7 }
  0x48   : > { %350 = vrot.lane.b32.xlu1 %v271_v2, %s1313_s19  ;;  %300 = vrot.lane.b32.xlu0 %v268_v1, %s1311_s7 }
  0x4c   : > { %385 = vrot.lane.b32.xlu1 %v271_v2, %s1314_s29  ;;  %352 = vrot.lane.b32.xlu0 %v269_v0, %s1313_s19 }
  0x50   : > { %348 = vrot.lane.b32.xlu1 %v268_v1, %s1313_s19  ;;  %387 = vrot.lane.b32.xlu0 %v269_v0, %s1314_s29  ;;  %s1321_s19 = smov 18  }
  0x54   : > { %337 = vrot.lane.b32.xlu1 %v271_v2, %s1315_s11  ;;  %383 = vrot.lane.b32.xlu0 %v268_v1, %s1314_s29  ;;  %s1322_s29 = smov 19  }
  0x58   : > { %372 = vrot.lane.b32.xlu1 %v271_v2, %s1316_s13  ;;  %339 = vrot.lane.b32.xlu0 %v269_v0, %s1315_s11 }
  0x5c   : > { %335 = vrot.lane.b32.xlu1 %v268_v1, %s1315_s11  ;;  %374 = vrot.lane.b32.xlu0 %v269_v0, %s1316_s13 }
  0x60   : > { %407 = vrot.lane.b32.xlu1 %v271_v2, %s1317_s10  ;;  %370 = vrot.lane.b32.xlu0 %v268_v1, %s1316_s13  ;;  %s1323_s13 = smov 1  }
  0x64   : > { %405 = vrot.lane.b32.xlu1 %v268_v1, %s1317_s10  ;;  %409 = vrot.lane.b32.xlu0 %v269_v0, %s1317_s10  ;;  %s1324_s10 = smov 17  }
  0x68   : > { %437 = vperm.xlu0 %1172, %v434_v6  }
  0xaa   : > { %v318_v9 = vpop.permute.xlu1 %317  ;;  %v281_v10 = vpop.permute.xlu0 %280 }
  0xae   : > { %v314_v11 = vpop.permute.xlu1 %313  ;;  %v277_v12 = vpop.permute.xlu0 %276 }
  0xaf   : > { %v322_v13 = vsel %vm319_vm1, %v318_v9, %v314_v11  ;;  %v287_v14 = vsel %vm284_vm2, %v281_v10, %v277_v12 }
  0xb0   : > { %v328_v15 = vrot.slane %v322_v13, 4  ;;  %v293_v16 = vrot.slane %v287_v14, 4 }
  0xb2   : > { %334 = vst [vmem:[#allocation2 + $0x28] sm:$0xf0] %v328_v15  ;;  %299 = vst [vmem:[#allocation2 + $0x10] sm:$0xf0] %v293_v16  ;;  %v316_v17 = vpop.permute.xlu1 %315  ;;  %v279_v18 = vpop.permute.xlu0 %278 }
  0xb3   : > { %v320_v19 = vsel %vm319_vm1, %v316_v17, %v318_v9  ;;  %v321_v20 = vsel %vm319_vm1, %v314_v11, %v316_v17  ;;  %v285_v21 = vsel %vm284_vm2, %v279_v18, %v281_v10  ;;  %v286_v22 = vsel %vm284_vm2, %v277_v12, %v279_v18 }
  0xb4   : > { %v326_v23 = vrot.slane %v321_v20, 4  ;;  %v327_v24 = vrot.slane %v320_v19, 4  ;;  %v291_v25 = vrot.slane %v286_v22, 4  ;;  %v292_v26 = vrot.slane %v285_v21, 4 }
  0xb6   : > { %332 = vst [vmem:[#allocation2 + $0x18] sm:$0xf0] %v326_v23  ;;  %333 = vst [vmem:[#allocation2 + $0x20] sm:$0xf0] %v327_v24  ;;  %v305_v27 = vpop.permute.xlu1 %304  ;;  %v303_v28 = vpop.permute.xlu0 %302 }
  0xb7   : > { %297 = vst [vmem:[#allocation2] sm:$0xf0] %v291_v25  ;;  %298 = vst [vmem:[#allocation2 + $0x8] sm:$0xf0] %v292_v26  ;;  %v307_v29 = vsel %vm306_vm3, %v303_v28, %v305_v27 }
  0xb8   : > { %311 = vst [vmem:[#allocation2 + $0x20] sm:$0xf] %v307_v29  ;;  %v418_v29 = vld [vmem:[%s1683_s1] sm:$0xff] }
  0xb9   : > { %v421_v46 = vld [vmem:[#allocation2 + $0x10] sm:$0xff] }
  0xba   : > { %v351_v30 = vpop.permute.xlu1 %350  ;;  %v301_v31 = vpop.permute.xlu0 %300 }
  0xbb   : > { %v308_v32 = vsel %vm306_vm3, %v301_v31, %v303_v28  ;;  %v309_v33 = vsel %vm306_vm3, %v305_v27, %v301_v31  ;;  %v601_v31 = vshrl.u32 %v282_v7, 7 }
  0xbc   : > { %310 = vst [vmem:[#allocation2 + $0x18] sm:$0xf] %v308_v32  ;;  %312 = vst [vmem:[#allocation2 + $0x28] sm:$0xf] %v309_v33  ;;  %v598_v33 = vld [vmem:[%s1687_s5] sm:$0x7] }
  0xbd   : > { %v610_v32 = vsub.s32 2, %v601_v31 }
  0xbe   : > { %v386_v34 = vpop.permute.xlu1 %385  ;;  %v353_v35 = vpop.permute.xlu0 %352  ;;  %v420_v37 = vld [vmem:[#allocation2 + $0x8] sm:$0xff]  ;;  %v419_v53 = vld [vmem:[#allocation2] sm:$0xff] }
  0xbf   : > { %v355_v36 = vsel %vm354_vm4, %v351_v30, %v353_v35  ;;  %v423_v38 = vld [vmem:[#allocation2 + $0x20] sm:$0xff] }
  0xc0   : > { %v362_v39 = vrot.slane %v355_v36, 4  ;;  %v1063_v40 = vpack.c.bf16 %v423_v38, %v420_v37  ;;  %v602_v37 = vsub.s32 0, %v601_v31  ;;  %v611_v38 = vrot.slane %v598_v33, %v610_v32 }
  0xc2   : > { %368 = vst [vmem:[#allocation2 + $0x38] sm:$0xf0] %v362_v39  ;;  %v349_v41 = vpop.permute.xlu1 %348  ;;  %v388_v42 = vpop.permute.xlu0 %387  ;;  %1064 = vmatprep.subr.bf16.mxu0 %v1063_v40 }
  0xc3   : > { %v356_v43 = vsel %vm354_vm4, %v349_v41, %v351_v30  ;;  %v357_v44 = vsel %vm354_vm4, %v353_v35, %v349_v41  ;;  %v390_v45 = vsel %vm389_vm5, %v386_v34, %v388_v42  ;;  %v424_v47 = vld [vmem:[#allocation2 + $0x28] sm:$0xff]  ;;  %v422_v48 = vld [vmem:[#allocation2 + $0x18] sm:$0xff] }
  0xc4   : > { %v361_v49 = vrot.slane %v356_v43, 4  ;;  %v363_v50 = vrot.slane %v357_v44, 4  ;;  %v397_v51 = vrot.slane %v390_v45, 4  ;;  %v1072_v52 = vpack.c.bf16 %v424_v47, %v421_v46 }
  0xc5   : > { %v1065_v54 = vpack.c.bf16 %v422_v48, %v419_v53  ;;  %v603_v46 = vrot.slane %v598_v33, %v602_v37 }
  0xc6   : > { %367 = vst [vmem:[#allocation2 + $0x30] sm:$0xf0] %v361_v49  ;;  %369 = vst [vmem:[#allocation2 + $0x40] sm:$0xf0] %v363_v50  ;;  %v338_v55 = vpop.permute.xlu1 %337  ;;  %1073 = vmatpush3.bf16.msra.mxu1 %v1072_v52  ;;  %v384_v56 = vpop.permute.xlu0 %383 }
  0xc7   : > { %403 = vst [vmem:[#allocation2 + $0x50] sm:$0xf0] %v397_v51  ;;  %v391_v57 = vsel %vm389_vm5, %v384_v56, %v386_v34  ;;  %v392_v58 = vsel %vm389_vm5, %v388_v42, %v384_v56  ;;  %1066 = vmatpush1.bf16.msra.mxu0 %v1065_v54  ;;  %1074 = vmatprep.subr.bf16.mxu1 %v1312_v3  ;;  %v606_v42 = vsub.s32 1, %v601_v31  ;;  %v750_v54 = vld [vmem:[%s1686_s4] sm:$0xf] }
  0xc8   : > { %v396_v59 = vrot.slane %v391_v57, 4  ;;  %v398_v60 = vrot.slane %v392_v58, 4 }
  0xc9   : > { %v607_v49 = vrot.slane %v598_v33, %v606_v42 }
  0xca   : > { %402 = vst [vmem:[#allocation2 + $0x48] sm:$0xf0] %v396_v59  ;;  %404 = vst [vmem:[#allocation2 + $0x58] sm:$0xf0] %v398_v60  ;;  %v373_v61 = vpop.permute.xlu1 %372  ;;  %v340_v62 = vpop.permute.xlu0 %339 }
  0xcb   : > { %v1523_v63 = vsel %vm341_vm6, %v338_v55, %v340_v62 }
  0xcc   : > { %346 = vst [vmem:[#allocation2 + $0x38] sm:$0xf] %v1523_v63 }
  0xce   : > { %v336_v0 = vpop.permute.xlu1 %335  ;;  %v375_v1 = vpop.permute.xlu0 %374 }
  0xcf   : > { %v1529_v2 = vsel %vm341_vm6, %v336_v0, %v338_v55  ;;  %v1533_v5 = vsel %vm341_vm6, %v340_v62, %v336_v0  ;;  %v377_v6 = vsel %vm376_vm7, %v373_v61, %v375_v1 }
  0xd0   : > { %345 = vst [vmem:[#allocation2 + $0x30] sm:$0xf] %v1529_v2  ;;  %347 = vst [vmem:[#allocation2 + $0x40] sm:$0xf] %v1533_v5 }
  0xd1   : > { %381 = vst [vmem:[#allocation2 + $0x50] sm:$0xf] %v377_v6 }
  0xd2   : > { %v408_v9 = vpop.permute.xlu1 %407  ;;  %v371_v10 = vpop.permute.xlu0 %370 }
  0xd3   : > { %v378_v11 = vsel %vm376_vm7, %v371_v10, %v373_v61  ;;  %v379_v12 = vsel %vm376_vm7, %v375_v1, %v371_v10  ;;  %v426_v18 = vld [vmem:[#allocation2 + $0x38] sm:$0xff] }
  0xd4   : > { %380 = vst [vmem:[#allocation2 + $0x48] sm:$0xf] %v378_v11  ;;  %382 = vst [vmem:[#allocation2 + $0x58] sm:$0xf] %v379_v12 }
  0xd6   : > { %v406_v13 = vpop.permute.xlu1 %405  ;;  %v410_v14 = vpop.permute.xlu0 %409 }
  0xd7   : > { %v413_v15 = vsel %vm411_vm8, %v406_v13, %v408_v9  ;;  %v412_v16 = vsel %vm411_vm8, %v408_v9, %v410_v14  ;;  %v414_v17 = vsel %vm411_vm8, %v410_v14, %v406_v13  ;;  %v425_v21 = vld [vmem:[#allocation2 + $0x30] sm:$0xff]  ;;  %v427_v23 = vld [vmem:[#allocation2 + $0x40] sm:$0xff] }
  0xd8   : > { %v429_v19 = vld [vmem:[#allocation2 + $0x50] sm:$0xff]  ;;  %415 = vst [vmem:[#allocation2 + $0x60] sm:$0xf] %v413_v15  ;;  %416 = vst [vmem:[#allocation2 + $0x68] sm:$0xf] %v412_v16 }
  0xd9   : > { %417 = vst [vmem:[#allocation2 + $0x70] sm:$0xf] %v414_v17  ;;  %v1067_v20 = vpack.c.bf16 %v429_v19, %v426_v18 }
  0xdb   : > { %1068 = vmatprep.subr.bf16.mxu0 %v1067_v20  ;;  %v428_v22 = vld [vmem:[#allocation2 + $0x48] sm:$0xff]  ;;  %v430_v24 = vld [vmem:[#allocation2 + $0x58] sm:$0xff] }
  0xdc   : > { %v1069_v25 = vpack.c.bf16 %v428_v22, %v425_v21  ;;  %v1075_v26 = vpack.c.bf16 %v430_v24, %v427_v23 }
  0xde   : > { %1070 = vmatpush1.bf16.msra.mxu0 %v1069_v25  ;;  %1076 = vmatpush3.bf16.msra.mxu1 %v1075_v26 }
  0xdf   : > { %v432_v27 = vld [vmem:[#allocation2 + $0x68] sm:$0xf]  ;;  %1037 = vmatprep.subr.mxu1 %v1318_v4  ;;  %v431_v30 = vld [vmem:[#allocation2 + $0x60] sm:$0xf] }
  0xe0   : > { %v433_v28 = vld [vmem:[#allocation2 + $0x70] sm:$0xf]  ;;  %1003 = vmatprep.subr.msk.mxu0 %vm444_vm9, %v432_v27 }
  0xe2   : > { %1004 = vmatpush1.msk.msra.mxu0 %vm444_vm9, %v431_v30  ;;  %1038 = vmatpush3.msk.msra.mxu1 %vm444_vm9, %v433_v28 }
  0xe3   : > { %1005 = vmatmul.mubr.msk.f32.vlgmr.msra.gmra.mrb[0].mxu0 %vm440_vm10, %v418_v29  ;;  %1040 = vmatmul.mubr.msk.f32.vlgmr.msra.gmra.mrb[0].mxu1 %vm440_vm10, %v418_v29 }
  0xe4   : > { %1093 = vmatprep.subr.bf16.mxu1 %v1312_v3  ;;  %824 = vmatprep.mubr.f32.mxu0 %v1318_v4 }
  0xe5   : > { %1060 = vmatprep.mubr.msk.f32.mxu1 %vm1319_vm0, %v1318_v4  ;;  %vm756_vm0 = vcmask 588800  }
  0xe7   : > { %v438_v34 = vpop.permute.xlu0 %437 }
 0x1b6   : > { %v591_v35 = vpop.f32.mrb[0].mxu1  ;;  %v520_v36 = vpop.f32.mrb[0].mxu0 }
 0x1b7   : > { %v592_v39 = vadd.f32 %v591_v35, %v438_v34  ;;  %v521_v40 = vadd.f32 %v520_v36, %v438_v34  ;;  %v522_v41 = vpop.f32.mrb[1].mxu0  ;;  %v1041_v43 = vpop.f32.mrb[1].mxu1 }
 0x1b8   : > { %v523_v44 = vadd.f32 %v522_v41, %v438_v34 }
 0x1b9   : > { %v597_v45 = vmax.f32 %v592_v39, 0.0  ;;  %v595_v7 = vmax.f32 %v521_v40, 0.0 }
 0x1ba   : > { %v596_v48 = vmax.f32 %v523_v44, 0.0 }
 0x1bb   : > { %v1550_v47 = vmul.f32 %v611_v38, %v597_v45  ;;  %v1554_v50 = vmul.f32 %v603_v46, %v595_v7 }
 0x1bc   : > { %v1556_v51 = vmul.f32 %v607_v49, %v596_v48 }
 0x1bd   : > { %635 = vrot.lane.b32.xlu1 %v1550_v47, %s1321_s19  ;;  %622 = vrot.lane.b32.xlu0 %v1550_v47, %s1322_s29 }
 0x1be   : > { %v1183_v52 = vpack.i.bf16 %v1556_v51, %v1554_v50  ;;  %v1193_v53 = vpack.i.bf16 %v1550_v47, %v1556_v51 }
 0x1c1   : > { %661 = vrot.lane.b32.xlu1 %v1550_v47, %s1323_s13  ;;  %648 = vrot.lane.b32.xlu0 %v1550_v47, %s1324_s10 }
 0x1c5   : > { %1184 = vrot.lane.b32.xlu0 %v1183_v52, %s1324_s10  ;;  %1174 = vrot.lane.b32.xlu1 %v1183_v52, %s1322_s29  ;;  %s1244_s10 = sshll.u32 %s1326_s26, 4  ;;  %s1245_s10 = int_to_ptr.vmem [resolvable:$false] %s1244_s10 }
 0x1c6   : > { %p1247_p5 = scmp.lt.s32.totalorder %s1640_s16, %s1245_s10 }
 0x1c9   : > { %685 = vrot.lane.b32.xlu0 %v1554_v50, %s1325_s12  ;;  %1179 = vrot.lane.b32.xlu1 %v1183_v52, %s1321_s19 }
 0x1cd   : > { %1194 = vrot.lane.b32.xlu0 %v1193_v53, %s1310_s18  ;;  %1189 = vrot.lane.b32.xlu1 %v1183_v52, %s1323_s13  ;;  %s1240_s13 = scalar_lea.vmem %s1640_s16, 192 }
 0x1ce   : > { %p1241_p6 = scmp.ne.s32.totalorder %s1640_s16, %s1240_s13 }
 0x1d0   : > { %p1242_p12 = pnand %p1241_p6, %p1696_p11 }
 0x1d1   : > { %1199 = vrot.lane.b32.xlu0 %v1193_v53, %s1325_s12  ;;  %673 = vrot.lane.b32.xlu1 %v1554_v50, %s1310_s18  ;;  %s1246_s12 = scalar_lea.vmem %s1245_s10, 384 }
 0x1d2   : > { %p1243_p13 = pneg %p1242_p12  ;;  %p1248_p10 = scmp.lt.s32.totalorder %s1246_s12, %s1240_s13 }
 0x1d4   : > { %p1249_p2 = por %p1248_p10, %p1247_p5 }
 0x1d5   : > { %712 = vrot.lane.b32.xlu0 %v1556_v51, %s1315_s11  ;;  %1204 = vrot.lane.b32.xlu1 %v1193_v53, %s1309_s15 }
 0x1d6   : > { %p1250_p4 = pnand %p1249_p2, %p1243_p13 }
 0x1d9   : > { %710 = vrot.lane.b32.xlu0 %v1554_v50, %s1315_s11  ;;  %698 = vrot.lane.b32.xlu1 %v1554_v50, %s1309_s15 }
 0x1dd   : > { %714 = vrot.lane.b32.xlu1 %v1550_v47, %s1315_s11  ;;  %s1108_s11 = smul.u32 192, %s1383_s25  ;;  %s914_s25 = scalar_lea.sflag [#allocation6], %s1461_s20 }
 0x1df   : > { %s1638_s29 = scalar_lea.hbm %s1688_s6, %s1108_s11 }
 0x1e1   : > { %753 = vperm.xlu1 %1208, %v750_v54  }
 0x22f   : > { %v636_v55 = vpop.permute.xlu1 %635  ;;  %v623_v56 = vpop.permute.xlu0 %622 }
 0x233   : > { %v662_v57 = vpop.permute.xlu1 %661  ;;  %v649_v58 = vpop.permute.xlu0 %648 }
 0x237   : > { %v1185_v59 = vpop.permute.xlu0 %1184  ;;  %v1175_v60 = vpop.permute.xlu1 %1174 }
 0x238   : > { %v1177_v61 = vunpack.i.h.bf16 %v1175_v60  ;;  %v1176_v62 = vunpack.i.l.bf16 %v1175_v60  ;;  %v1187_v10 = vunpack.i.h.bf16 %v1185_v59  ;;  %v1186_v11 = vunpack.i.l.bf16 %v1185_v59 }
 0x23a   : > { %v625_v12 = vsel %vm624_vm11, %v1177_v61, %v623_v56  ;;  %v627_v13 = vsel %vm624_vm11, %v623_v56, %v1176_v62  ;;  %v626_v16 = vsel %vm624_vm11, %v1176_v62, %v1177_v61  ;;  %v651_v27 = vsel %vm650_vm13, %v1187_v10, %v649_v58  ;;  %v722_v61 = vld [vmem:[%s1685_s3] sm:$0xf] }
 0x23b   : > { %v1581_v0 = vpop.permute.xlu0 %685  ;;  %v1180_v1 = vpop.permute.xlu1 %1179  ;;  %v653_v28 = vsel %vm650_vm13, %v649_v58, %v1186_v11  ;;  %v652_v29 = vsel %vm650_vm13, %v1186_v11, %v1187_v10 }
 0x23c   : > { %v1182_v6 = vunpack.i.h.bf16 %v1180_v1  ;;  %v1181_v9 = vunpack.i.l.bf16 %v1180_v1 }
 0x23e   : > { %v638_v14 = vsel %vm637_vm12, %v1182_v6, %v636_v55  ;;  %v640_v15 = vsel %vm637_vm12, %v636_v55, %v1181_v9  ;;  %v639_v17 = vsel %vm637_vm12, %v1181_v9, %v1182_v6 }
 0x23f   : > { %v1079_v18 = vpack.c.bf16 %v640_v15, %v627_v13  ;;  %v1094_v19 = vpack.c.bf16 %v638_v14, %v625_v12  ;;  %v1195_v20 = vpop.permute.xlu0 %1194  ;;  %v1190_v21 = vpop.permute.xlu1 %1189  ;;  %v1077_v22 = vpack.c.bf16 %v639_v17, %v626_v16 }
 0x240   : > { %v1197_v23 = vunpack.i.h.bf16 %v1195_v20  ;;  %v1196_v24 = vunpack.i.l.bf16 %v1195_v20  ;;  %v1192_v25 = vunpack.i.h.bf16 %v1190_v21  ;;  %v1191_v26 = vunpack.i.l.bf16 %v1190_v21 }
 0x241   : > { %1078 = vmatprep.subr.bf16.mxu0 %v1077_v22  ;;  %1095 = vmatpush3.bf16.msra.mxu1 %v1094_v19 }
 0x242   : > { %v664_v30 = vsel %vm663_vm14, %v1192_v25, %v662_v57  ;;  %v666_v31 = vsel %vm663_vm14, %v662_v57, %v1191_v26  ;;  %1080 = vmatpush1.bf16.msra.mxu0 %v1079_v18  ;;  %1096 = vmatprep.subr.bf16.mxu1 %v1312_v3  ;;  %v665_v32 = vsel %vm663_vm14, %v1191_v26, %v1192_v25 }
 0x243   : > { %v1097_v33 = vpack.c.bf16 %v664_v30, %v651_v27  ;;  %v1083_v34 = vpack.c.bf16 %v666_v31, %v653_v28  ;;  %v1200_v35 = vpop.permute.xlu0 %1199  ;;  %v674_v36 = vpop.permute.xlu1 %673  ;;  %v1081_v37 = vpack.c.bf16 %v665_v32, %v652_v29  ;;  %v679_v38 = vsel %vm284_vm2, %v1196_v24, %v1197_v23 }
 0x244   : > { %v681_v39 = vsel %vm284_vm2, %v1197_v23, %v674_v36  ;;  %v680_v40 = vsel %vm284_vm2, %v674_v36, %v1196_v24  ;;  %v1085_v41 = vpack.c.bf16 %v679_v38, %v1556_v51  ;;  %v1202_v42 = vunpack.i.h.bf16 %v1200_v35 }
 0x245   : > { %1082 = vmatprep.subr.bf16.mxu0 %v1081_v37  ;;  %1098 = vmatpush3.bf16.msra.mxu1 %v1097_v33  ;;  %v1201_v43 = vunpack.i.l.bf16 %v1200_v35  ;;  %v1100_v44 = vpack.c.bf16 %v681_v39, %v1550_v47  ;;  %v1087_v46 = vpack.c.bf16 %v680_v40, %v1554_v50 }
 0x246   : > { %1084 = vmatpush1.bf16.msra.mxu0 %v1083_v34  ;;  %1099 = vmatprep.subr.bf16.mxu1 %v1312_v3  ;;  %v694_v55 = vsel %vm691_vm15, %v1202_v42, %v1581_v0 }
 0x247   : > { %v1205_v45 = vpop.permute.xlu1 %1204  ;;  %1086 = vmatprep.subr.bf16.mxu0 %v1085_v41  ;;  %v713_v49 = vpop.permute.xlu0 %712  ;;  %v692_v52 = vsel %vm691_vm15, %v1201_v43, %v1202_v42  ;;  %v693_v47 = vsel %vm691_vm15, %v1581_v0, %v1201_v43 }
 0x248   : > { %v1207_v7 = vunpack.i.h.bf16 %v1205_v45  ;;  %v1206_v48 = vunpack.i.l.bf16 %v1205_v45 }
 0x249   : > { %1101 = vmatpush3.bf16.msra.mxu1 %v1100_v44 }
 0x24a   : > { %1088 = vmatpush1.bf16.msra.mxu0 %v1087_v46  ;;  %v704_v51 = vsel %vm319_vm1, %v1206_v48, %v1207_v7  ;;  %1102 = vmatprep.subr.bf16.mxu1 %v1312_v3 }
 0x24b   : > { %v699_v53 = vpop.permute.xlu1 %698  ;;  %v1089_v54 = vpack.c.bf16 %v704_v51, %v692_v52  ;;  %v711_v59 = vpop.permute.xlu0 %710 }
 0x24c   : > { %v705_v50 = vsel %vm319_vm1, %v699_v53, %v1206_v48  ;;  %v706_v56 = vsel %vm319_vm1, %v1207_v7, %v699_v53  ;;  %v717_v62 = vsel %vm341_vm6, %v711_v59, %v713_v49 }
 0x24d   : > { %v1091_v57 = vpack.c.bf16 %v705_v50, %v693_v47  ;;  %v1103_v58 = vpack.c.bf16 %v706_v56, %v694_v55  ;;  %1090 = vmatprep.subr.bf16.mxu0 %v1089_v54 }
 0x24f   : > { %v715_v60 = vpop.permute.xlu1 %714  ;;  %1092 = vmatpush1.bf16.msra.mxu0 %v1091_v57  ;;  %1104 = vmatpush3.bf16.msra.mxu1 %v1103_v58 }
 0x250   : > { %v716_v3 = vsel %vm341_vm6, %v713_v49, %v715_v60  ;;  %1058 = vmatprep.subr.mxu1 %v1318_v4  ;;  %v718_v0 = vsel %vm341_vm6, %v715_v60, %v711_v59 }
 0x251   : > { %776 = vmatprep.subr.mxu0 %v716_v3 }
 0x253   : > { %777 = vmatpush1.msra.mxu0 %v717_v62  ;;  %1059 = vmatpush3.msra.mxu1 %v718_v0 }
 0x254   : > { %1008 = vmatmul.mubr.msk.f32.vlgmr.msra.gmra.mrb[2].mxu0 %vm756_vm0, %v722_v61  ;;  %1061 = vmatmul.mubr.msk.f32.vlgmr.msra.gmra.mrb[2].mxu1 %vm756_vm0, %v722_v61 }
 0x260   : > { %v754_v1 = vpop.permute.xlu1 %753 }
 0x327   : > { %v826_v4 = vpop.f32.mrb[2].mxu0  ;;  %v897_v6 = vpop.f32.mrb[2].mxu1 }
 0x328   : > { %v827_v9 = vadd.f32 %v826_v4, %v754_v1  ;;  %v898_v10 = vadd.f32 %v897_v6, %v754_v1  ;;  %v828_v11 = vpop.f32.mrb[3].mxu0  ;;  %v1062_v12 = vpop.f32.mrb[3].mxu1 }
 0x329   : > { %v829_v13 = vadd.f32 %v828_v11, %v754_v1 }
 0x32a   : > { %v901_v14 = vmax.f32 %v827_v9, 0.0  ;;  %v903_v15 = vmax.f32 %v898_v10, 0.0 }
 0x32b   : > { %v902_v8 = vmax.f32 %v829_v13, 0.0 }
 0x32c   : > { %v904_v16 = vadd.f32 %v901_v14, %v1529_v2  ;;  %v906_v17 = vadd.f32 %v903_v15, %v1533_v5 }
 0x32d   : > { %v905_v18 = vadd.f32 %v902_v8, %v1523_v63 }
 0x32e   : > { %912 = vst [vmem:[%s267_s28 + $0x8] sm:$0xf] %v906_v17 }
 0x32f   : > { %v909_v19 = vcombine.low %v904_v16, %v905_v18 }
 0x331   : > { %911 = vst [vmem:[%s267_s28] sm:$0xff] %v909_v19 }
 0x332   : > { %1253 = shalt.err (!%p1250_p4)
}
 0x333   : > { %s1254_s20 = scalar_lea.hbm %s1638_s29, 192  ;;  %s1258_s15 = scalar_lea.hbm %s1688_s6, 384 }
 0x334   : > { %p1255_p7 = scmp.ne.s32.totalorder %s1638_s29, %s1254_s20  ;;  %p1259_p0 = scmp.lt.u32.totalorder %s1638_s29, %s1688_s6 }
 0x335   : > { %p1260_p1 = scmp.lt.u32.totalorder %s1258_s15, %s1254_s20  ;;  %p1262_p6 = scmp.lt.u32.totalorder %s1254_s20, %s1638_s29 }
 0x336   : > { %p1256_p8 = pnand %p1255_p7, %p1696_p11 }
 0x337   : > { %p1261_p3 = por %p1260_p1, %p1259_p0 }
 0x338   : > { %p1257_p9 = pneg %p1256_p8 }
 0x339   : > { %p1263_p12 = por %p1262_p6, %p1261_p3 }
 0x33b   : > { %p1264_p13 = pnand %p1263_p12, %p1257_p9 }
 0x33d   : > { %1267 = shalt.err (!%p1264_p13)
}
 0x33e   : > { %1111 = dma.vmem_to_hbm [thread:$0]  (%p1696_p11), %s1640_s16, 192, %s1638_s29, %s914_s25  }
 0x33f PF: > { %s940_s28 = sand.u32 1, %s1294_s21   ;;  %p1697_p5 = scmp.ne.s32.totalorder %s1692_s9, 0 }
 0x340   : > { %p1698_p10 = scmp.ge.s32.totalorder %s1306_s24, 2  ;;  %s941_s7 = scalar_lea.sflag [#allocation6], %s940_s28 }
 0x342   : > { %p1118_p2 = pnand %p1698_p10, %p1697_p5 }
 0x344   : > { %1289 = dma.done.wait (!%p1118_p2), %s941_s7, 192  }
 0x345   : > { %1291 = vsyncadd (!%p1118_p2), %s941_s7, 4294967104  ;;  %p19_p4 = scmp.ge.s32.totalorder %s1387_s27, 4   ;;  %s1699_s21 = smov %s1298_s22 }
 0x346   : > { %s1700_s22 = smov %s1302_s23  ;;  %s1701_s23 = smov %s1399_s30 }
 0x347   : > { %s1702_s24 = smov %s1387_s27  ;;  %21 = sbr.rel (!%p19_p4) target bundleno = 5 (0x5), region = 89 }
 0x34e   :  { %946 = vsyncpa [#allocation5], 1 }
 0x34f   :  { %948 = vsyncpa [#allocation5 + $0x1], 1 }
 0x350   :  { %949 = vsyncpa [#allocation6], 1 }
 0x351   :  { %951 = vsyncpa [#allocation6 + $0x1], 1 }

</bundles_post_ra>
